<compile_context>
chip_gen: v7x
topology: tpu7x:2x2x1
jax: 0.10.0
libtpu: 0.0.40
codegen_flags: <defaults>
</compile_context>

<pallas_src>
import jax
import jax.numpy as jnp
from jax.experimental import pallas as pl
from jax.experimental.pallas import tpu as pltpu

IMG = 28
FLAT = IMG * IMG        # 784
PAD_W = 1024            # 8 lane-tiles of padded scratch per sample
X_OFF = 128             # the flat image lives at lanes [128, 128 + 784)


def _fused_cnn_kernel(w33_ref, x_ref, mask_ref, wfc_ref, o_ref, pad_ref):
    """conv3x3(same, no bias) + flatten + fc, for one batch tile."""
    tb = x_ref.shape[0]

    # Build the zero-bordered flat tile in VMEM.  Border zeros are rewritten
    # every step (no reliance on program_id==0, safe under megacore splits);
    # the x store starts at lane 128, i.e. vreg-aligned.
    pad_ref[:, 0:X_OFF] = jnp.zeros((tb, X_OFF), jnp.float32)
    pad_ref[:, PAD_W - 128:PAD_W] = jnp.zeros((tb, 128), jnp.float32)
    pad_ref[:, X_OFF:X_OFF + FLAT] = x_ref[...]

    # 3x3 "same" convolution in flat layout: nine statically shifted windows,
    # each scaled by its tap (scalar from SMEM) and gated by the precomputed
    # image-boundary mask (resident in VMEM).
    acc = jnp.zeros((tb, FLAT), jnp.float32)
    for di in range(3):
        for dj in range(3):
            off = (di - 1) * IMG + (dj - 1)          # in {-29..29}
            tap = w33_ref[di, dj]                    # scalar tap from SMEM
            t = 3 * di + dj
            m = mask_ref[t:t + 1, :]                 # (1, 784) boundary mask
            win = pad_ref[:, X_OFF + off:X_OFF + off + FLAT]   # (tb, 784)
            acc = acc + (tap * m) * win

    # Fused fc: (tb, 784) @ (784, 10) on the MXU, straight to the output tile.
    o_ref[...] = jnp.dot(acc, wfc_ref[...], preferred_element_type=jnp.float32)


def _boundary_masks():
    """(9, 784) f32: mask[t, p] = 1 iff tap t reads an in-bounds pixel at p."""
    p = jnp.arange(FLAT, dtype=jnp.int32)
    r = p // IMG
    c = p % IMG
    rows = []
    for di in range(3):
        for dj in range(3):
            rr = r + (di - 1)
            cc = c + (dj - 1)
            valid = (rr >= 0) & (rr < IMG) & (cc >= 0) & (cc < IMG)
            rows.append(valid.astype(jnp.float32))
    return jnp.stack(rows, axis=0)


def cnn_forward(x_nchw, conv_w, fc_w, *, tile_b=256):
    """
    x_nchw: (B, 1, 28, 28) f32
    conv_w: (1, 1, 3, 3)   f32  (PyTorch Conv2d weight layout)
    fc_w:   (10, 784)      f32  (PyTorch Linear weight layout)
    returns (B, 10) f32
    """
    B = x_nchw.shape[0]
    x_flat = x_nchw.reshape(B, FLAT)   # row-major view == torch .view(-1, 784)
    w33 = conv_w.reshape(3, 3)
    wfc_t = fc_w.T                     # (784, 10), hoisted out of the kernel
    masks = _boundary_masks()          # (9, 784) constants

    tb = B if B <= tile_b else tile_b  # ~4-5 MiB VMEM/step at tb=256: fits all gens
    grid = (pl.cdiv(B, tb),)

    return pl.pallas_call(
        _fused_cnn_kernel,
        out_shape=jax.ShapeDtypeStruct((B, 10), jnp.float32),
        grid=grid,
        in_specs=[
            pl.BlockSpec(memory_space=pltpu.MemorySpace.SMEM),   # 3x3 taps
            pl.BlockSpec((tb, FLAT), lambda i: (i, 0)),          # x batch tile
            pl.BlockSpec((9, FLAT), lambda i: (0, 0)),           # masks (resident)
            pl.BlockSpec((FLAT, 10), lambda i: (0, 0)),          # fc weight (resident)
        ],
        out_specs=pl.BlockSpec((tb, 10), lambda i: (i, 0)),
        scratch_shapes=[pltpu.VMEM((tb, PAD_W), jnp.float32)],
        compiler_params=pltpu.CompilerParams(
            dimension_semantics=("parallel",)),
    )(w33, x_flat, masks, wfc_t)


# Pure-JAX reference for the correctness check.
def cnn_reference(x_nchw, conv_w, fc_w):
    conv_out = jax.lax.conv_general_dilated(
        x_nchw, conv_w, window_strides=(1, 1), padding="SAME",
        dimension_numbers=("NCHW", "OIHW", "NCHW"))
    flat = conv_out.reshape(x_nchw.shape[0], FLAT)
    return flat @ fc_w.T


if __name__ == "__main__":
    key = jax.random.PRNGKey(0)
    k_x, k_cw, k_fw = jax.random.split(key, 3)

    B = 2
    x = jax.random.normal(k_x, (B, 1, IMG, IMG), dtype=jnp.float32)
    conv_w = jax.random.normal(k_cw, (1, 1, 3, 3), dtype=jnp.float32) * (1.0 / 3.0)
    fc_w = jax.random.normal(k_fw, (10, FLAT), dtype=jnp.float32) * (1.0 / 28.0)

    out = jax.block_until_ready(cnn_forward(x, conv_w, fc_w))
    ref = jax.block_until_ready(cnn_reference(x, conv_w, fc_w))

    assert out.shape == (B, 10), out.shape
    err = jnp.max(jnp.abs(out - ref))
    assert jnp.allclose(out, ref, atol=1e-3, rtol=1e-3), f"max abs err {err}"

    print("KERNEL_OK")
</pallas_src>

<mosaic_0001>
module attributes {stable_mosaic.version = 11 : i64} {
  func.func @_fused_cnn_kernel(%arg0: i32, %arg1: memref<3x3xf32, #tpu.memory_space<smem>>, %arg2: memref<2x784xf32, #tpu.memory_space<vmem>>, %arg3: memref<9x784xf32, #tpu.memory_space<vmem>>, %arg4: memref<784x10xf32, #tpu.memory_space<vmem>>, %arg5: memref<2x10xf32, #tpu.memory_space<vmem>>, %arg6: memref<2x1024xf32, #tpu.memory_space<vmem>>) attributes {dimension_semantics = [#tpu.dimension_semantics<parallel>], iteration_bounds = array<i64: 1>, scalar_prefetch = 0 : i64, scratch_operands = 1 : i64, tpu.core_type = #tpu.core_type<tc>, window_params = [{transform_indices = @transform_0, window_bounds = array<i64: 3, 3>}, {transform_indices = @transform_1, window_bounds = array<i64: 2, 784>}, {pipeline_mode = #tpu.pipeline_mode<synchronous>, transform_indices = @transform_2, window_bounds = array<i64: 9, 784>}, {pipeline_mode = #tpu.pipeline_mode<synchronous>, transform_indices = @transform_3, window_bounds = array<i64: 784, 10>}, {transform_indices = @transform_4, window_bounds = array<i64: 2, 10>}]} {
    %cst = arith.constant 0.000000e+00 : f32
    %0 = vector.broadcast %cst : f32 to vector<2x128xf32>
    %c0 = arith.constant 0 : index
    %c0_0 = arith.constant 0 : index
    %1 = vector.load %arg6[%c0, %c0_0] : memref<2x1024xf32, #tpu.memory_space<vmem>>, vector<2x128xf32>
    tpu.vector_store %arg6[%c0, %c0_0], %0 {strides = array<i32>} : memref<2x1024xf32, #tpu.memory_space<vmem>>, vector<2x128xf32>,
    %cst_1 = arith.constant 0.000000e+00 : f32
    %2 = vector.broadcast %cst_1 : f32 to vector<2x128xf32>
    %c0_2 = arith.constant 0 : index
    %c896 = arith.constant 896 : index
    %3 = vector.load %arg6[%c0_2, %c896] : memref<2x1024xf32, #tpu.memory_space<vmem>>, vector<2x128xf32>
    tpu.vector_store %arg6[%c0_2, %c896], %2 {strides = array<i32>} : memref<2x1024xf32, #tpu.memory_space<vmem>>, vector<2x128xf32>,
    %c0_3 = arith.constant 0 : index
    %c0_4 = arith.constant 0 : index
    %4 = vector.load %arg2[%c0_3, %c0_4] : memref<2x784xf32, #tpu.memory_space<vmem>>, vector<2x784xf32>
    %c0_5 = arith.constant 0 : index
    %c128 = arith.constant 128 : index
    %5 = vector.load %arg6[%c0_5, %c128] : memref<2x1024xf32, #tpu.memory_space<vmem>>, vector<2x784xf32>
    tpu.vector_store %arg6[%c0_5, %c128], %4 {strides = array<i32>} : memref<2x1024xf32, #tpu.memory_space<vmem>>, vector<2x784xf32>,
    %cst_6 = arith.constant 0.000000e+00 : f32
    %6 = vector.broadcast %cst_6 : f32 to vector<2x784xf32>
    %c0_7 = arith.constant 0 : index
    %c0_8 = arith.constant 0 : index
    %7 = memref.load %arg1[%c0_7, %c0_8] : memref<3x3xf32, #tpu.memory_space<smem>>
    %c0_9 = arith.constant 0 : index
    %c0_10 = arith.constant 0 : index
    %8 = vector.load %arg3[%c0_9, %c0_10] : memref<9x784xf32, #tpu.memory_space<vmem>>, vector<1x784xf32>
    %c0_11 = arith.constant 0 : index
    %c99 = arith.constant 99 : index
    %9 = vector.load %arg6[%c0_11, %c99] : memref<2x1024xf32, #tpu.memory_space<vmem>>, vector<2x784xf32>
    %10 = vector.broadcast %7 : f32 to vector<1x784xf32>
    %11 = arith.mulf %10, %8 : vector<1x784xf32>
    %12 = vector.broadcast %11 : vector<1x784xf32> to vector<2x784xf32>
    %13 = arith.mulf %12, %9 : vector<2x784xf32>
    %14 = arith.addf %6, %13 : vector<2x784xf32>
    %c0_12 = arith.constant 0 : index
    %c1 = arith.constant 1 : index
    %15 = memref.load %arg1[%c0_12, %c1] : memref<3x3xf32, #tpu.memory_space<smem>>
    %c1_13 = arith.constant 1 : index
    %c0_14 = arith.constant 0 : index
    %16 = vector.load %arg3[%c1_13, %c0_14] : memref<9x784xf32, #tpu.memory_space<vmem>>, vector<1x784xf32>
    %c0_15 = arith.constant 0 : index
    %c100 = arith.constant 100 : index
    %17 = vector.load %arg6[%c0_15, %c100] : memref<2x1024xf32, #tpu.memory_space<vmem>>, vector<2x784xf32>
    %18 = vector.broadcast %15 : f32 to vector<1x784xf32>
    %19 = arith.mulf %18, %16 : vector<1x784xf32>
    %20 = vector.broadcast %19 : vector<1x784xf32> to vector<2x784xf32>
    %21 = arith.mulf %20, %17 : vector<2x784xf32>
    %22 = arith.addf %14, %21 : vector<2x784xf32>
    %c0_16 = arith.constant 0 : index
    %c2 = arith.constant 2 : index
    %23 = memref.load %arg1[%c0_16, %c2] : memref<3x3xf32, #tpu.memory_space<smem>>
    %c2_17 = arith.constant 2 : index
    %c0_18 = arith.constant 0 : index
    %24 = vector.load %arg3[%c2_17, %c0_18] : memref<9x784xf32, #tpu.memory_space<vmem>>, vector<1x784xf32>
    %c0_19 = arith.constant 0 : index
    %c101 = arith.constant 101 : index
    %25 = vector.load %arg6[%c0_19, %c101] : memref<2x1024xf32, #tpu.memory_space<vmem>>, vector<2x784xf32>
    %26 = vector.broadcast %23 : f32 to vector<1x784xf32>
    %27 = arith.mulf %26, %24 : vector<1x784xf32>
    %28 = vector.broadcast %27 : vector<1x784xf32> to vector<2x784xf32>
    %29 = arith.mulf %28, %25 : vector<2x784xf32>
    %30 = arith.addf %22, %29 : vector<2x784xf32>
    %c1_20 = arith.constant 1 : index
    %c0_21 = arith.constant 0 : index
    %31 = memref.load %arg1[%c1_20, %c0_21] : memref<3x3xf32, #tpu.memory_space<smem>>
    %c3 = arith.constant 3 : index
    %c0_22 = arith.constant 0 : index
    %32 = vector.load %arg3[%c3, %c0_22] : memref<9x784xf32, #tpu.memory_space<vmem>>, vector<1x784xf32>
    %c0_23 = arith.constant 0 : index
    %c127 = arith.constant 127 : index
    %33 = vector.load %arg6[%c0_23, %c127] : memref<2x1024xf32, #tpu.memory_space<vmem>>, vector<2x784xf32>
    %34 = vector.broadcast %31 : f32 to vector<1x784xf32>
    %35 = arith.mulf %34, %32 : vector<1x784xf32>
    %36 = vector.broadcast %35 : vector<1x784xf32> to vector<2x784xf32>
    %37 = arith.mulf %36, %33 : vector<2x784xf32>
    %38 = arith.addf %30, %37 : vector<2x784xf32>
    %c1_24 = arith.constant 1 : index
    %c1_25 = arith.constant 1 : index
    %39 = memref.load %arg1[%c1_24, %c1_25] : memref<3x3xf32, #tpu.memory_space<smem>>
    %c4 = arith.constant 4 : index
    %c0_26 = arith.constant 0 : index
    %40 = vector.load %arg3[%c4, %c0_26] : memref<9x784xf32, #tpu.memory_space<vmem>>, vector<1x784xf32>
    %c0_27 = arith.constant 0 : index
    %c128_28 = arith.constant 128 : index
    %41 = vector.load %arg6[%c0_27, %c128_28] : memref<2x1024xf32, #tpu.memory_space<vmem>>, vector<2x784xf32>
    %42 = vector.broadcast %39 : f32 to vector<1x784xf32>
    %43 = arith.mulf %42, %40 : vector<1x784xf32>
    %44 = vector.broadcast %43 : vector<1x784xf32> to vector<2x784xf32>
    %45 = arith.mulf %44, %41 : vector<2x784xf32>
    %46 = arith.addf %38, %45 : vector<2x784xf32>
    %c1_29 = arith.constant 1 : index
    %c2_30 = arith.constant 2 : index
    %47 = memref.load %arg1[%c1_29, %c2_30] : memref<3x3xf32, #tpu.memory_space<smem>>
    %c5 = arith.constant 5 : index
    %c0_31 = arith.constant 0 : index
    %48 = vector.load %arg3[%c5, %c0_31] : memref<9x784xf32, #tpu.memory_space<vmem>>, vector<1x784xf32>
    %c0_32 = arith.constant 0 : index
    %c129 = arith.constant 129 : index
    %49 = vector.load %arg6[%c0_32, %c129] : memref<2x1024xf32, #tpu.memory_space<vmem>>, vector<2x784xf32>
    %50 = vector.broadcast %47 : f32 to vector<1x784xf32>
    %51 = arith.mulf %50, %48 : vector<1x784xf32>
    %52 = vector.broadcast %51 : vector<1x784xf32> to vector<2x784xf32>
    %53 = arith.mulf %52, %49 : vector<2x784xf32>
    %54 = arith.addf %46, %53 : vector<2x784xf32>
    %c2_33 = arith.constant 2 : index
    %c0_34 = arith.constant 0 : index
    %55 = memref.load %arg1[%c2_33, %c0_34] : memref<3x3xf32, #tpu.memory_space<smem>>
    %c6 = arith.constant 6 : index
    %c0_35 = arith.constant 0 : index
    %56 = vector.load %arg3[%c6, %c0_35] : memref<9x784xf32, #tpu.memory_space<vmem>>, vector<1x784xf32>
    %c0_36 = arith.constant 0 : index
    %c155 = arith.constant 155 : index
    %57 = vector.load %arg6[%c0_36, %c155] : memref<2x1024xf32, #tpu.memory_space<vmem>>, vector<2x784xf32>
    %58 = vector.broadcast %55 : f32 to vector<1x784xf32>
    %59 = arith.mulf %58, %56 : vector<1x784xf32>
    %60 = vector.broadcast %59 : vector<1x784xf32> to vector<2x784xf32>
    %61 = arith.mulf %60, %57 : vector<2x784xf32>
    %62 = arith.addf %54, %61 : vector<2x784xf32>
    %c2_37 = arith.constant 2 : index
    %c1_38 = arith.constant 1 : index
    %63 = memref.load %arg1[%c2_37, %c1_38] : memref<3x3xf32, #tpu.memory_space<smem>>
    %c7 = arith.constant 7 : index
    %c0_39 = arith.constant 0 : index
    %64 = vector.load %arg3[%c7, %c0_39] : memref<9x784xf32, #tpu.memory_space<vmem>>, vector<1x784xf32>
    %c0_40 = arith.constant 0 : index
    %c156 = arith.constant 156 : index
    %65 = vector.load %arg6[%c0_40, %c156] : memref<2x1024xf32, #tpu.memory_space<vmem>>, vector<2x784xf32>
    %66 = vector.broadcast %63 : f32 to vector<1x784xf32>
    %67 = arith.mulf %66, %64 : vector<1x784xf32>
    %68 = vector.broadcast %67 : vector<1x784xf32> to vector<2x784xf32>
    %69 = arith.mulf %68, %65 : vector<2x784xf32>
    %70 = arith.addf %62, %69 : vector<2x784xf32>
    %c2_41 = arith.constant 2 : index
    %c2_42 = arith.constant 2 : index
    %71 = memref.load %arg1[%c2_41, %c2_42] : memref<3x3xf32, #tpu.memory_space<smem>>
    %c8 = arith.constant 8 : index
    %c0_43 = arith.constant 0 : index
    %72 = vector.load %arg3[%c8, %c0_43] : memref<9x784xf32, #tpu.memory_space<vmem>>, vector<1x784xf32>
    %c0_44 = arith.constant 0 : index
    %c157 = arith.constant 157 : index
    %73 = vector.load %arg6[%c0_44, %c157] : memref<2x1024xf32, #tpu.memory_space<vmem>>, vector<2x784xf32>
    %74 = vector.broadcast %71 : f32 to vector<1x784xf32>
    %75 = arith.mulf %74, %72 : vector<1x784xf32>
    %76 = vector.broadcast %75 : vector<1x784xf32> to vector<2x784xf32>
    %77 = arith.mulf %76, %73 : vector<2x784xf32>
    %78 = arith.addf %70, %77 : vector<2x784xf32>
    %c0_45 = arith.constant 0 : index
    %c0_46 = arith.constant 0 : index
    %79 = vector.load %arg4[%c0_45, %c0_46] : memref<784x10xf32, #tpu.memory_space<vmem>>, vector<784x10xf32>
    %cst_47 = arith.constant dense<0.000000e+00> : vector<2x10xf32>
    %80 = tpu.matmul %78, %79, %cst_47 {dimension_numbers = #tpu.dot_dimension_numbers<[1], [0], [0], [1], [0, 0, 1, 1], [], []>} : vector<2x784xf32>, vector<784x10xf32>, vector<2x10xf32> -> vector<2x10xf32>
    %c0_48 = arith.constant 0 : index
    %c0_49 = arith.constant 0 : index
    %81 = vector.load %arg5[%c0_48, %c0_49] : memref<2x10xf32, #tpu.memory_space<vmem>>, vector<2x10xf32>
    tpu.vector_store %arg5[%c0_48, %c0_49], %80 {strides = array<i32>} : memref<2x10xf32, #tpu.memory_space<vmem>>, vector<2x10xf32>,
    return
  }
  func.func @transform_0(%arg0: i32) -> (i32, i32) {
    %c0_i32 = arith.constant 0 : i32
    %c0_i32_0 = arith.constant 0 : i32
    %c0_i32_1 = arith.constant 0 : i32
    return %c0_i32, %c0_i32_0 : i32, i32
  }
  func.func @transform_1(%arg0: i32) -> (i32, i32) {
    %c0_i32 = arith.constant 0 : i32
    %c0_i32_0 = arith.constant 0 : i32
    return %arg0, %c0_i32 : i32, i32
  }
  func.func @transform_2(%arg0: i32) -> (i32, i32) {
    %c0_i32 = arith.constant 0 : i32
    %c0_i32_0 = arith.constant 0 : i32
    %c0_i32_1 = arith.constant 0 : i32
    return %c0_i32, %c0_i32_0 : i32, i32
  }
  func.func @transform_3(%arg0: i32) -> (i32, i32) {
    %c0_i32 = arith.constant 0 : i32
    %c0_i32_0 = arith.constant 0 : i32
    %c0_i32_1 = arith.constant 0 : i32
    return %c0_i32, %c0_i32_0 : i32, i32
  }
  func.func @transform_4(%arg0: i32) -> (i32, i32) {
    %c0_i32 = arith.constant 0 : i32
    %c0_i32_0 = arith.constant 0 : i32
    return %arg0, %c0_i32 : i32, i32
  }
}

</mosaic_0001>

<bundles_post_ra>
// kernel: tpu_custom_call.1
= control target key start
LH: loop header
LB: loop body
LE: loop exit
PB: predicated region body
PF: predicated region fallthrough
CT: control target
= control target key end

     0   :  { %9 = vsyncpa [#allocation5], 0  ;;  %s2761_s0 = inlined_call_operand.vmem [shape: f32[3,3], index: 0, kind: input, shape index: {}]   ;;  %s2762_s1 = inlined_call_operand.vmem [shape: f32[2,784], index: 1, kind: input, shape index: {}]   ;;  %s2763_s2 = inlined_call_operand.vmem [shape: f32[9,784], index: 2, kind: input, shape index: {}]   ;;  %s2764_s3 = inlined_call_operand.vmem [shape: f32[784,10], index: 3, kind: input, shape index: {}]   ;;  %s2765_s4 = inlined_call_operand.hbm [shape: f32[2,10], index: 4, kind: output, shape index: {}]  }
   0x1   :  { %10 = vsyncpa [#allocation4], 0  ;;  %s17_s17 = sshll.u32 %s2761_s0, 4  ;;  %s18_s17 = int_to_ptr.vmem [resolvable:$true] %s17_s17 }
   0x2   :  { %s1785_s18 = scalar_lea.vmem %s18_s17, 64  ;;  %p1790_p1 = scmp.lt.s32.totalorder %s18_s17, %s18_s17 }
   0x3   :  { %p1786_p0 = scmp.ne.s32.totalorder %s18_s17, %s1785_s18  ;;  %p1791_p2 = scmp.lt.s32.totalorder %s1785_s18, %s1785_s18 }
   0x5   :  { %p1792_p3 = por %p1791_p2, %p1790_p1 }
   0x7   :  { %p1793_p4 = pnand %p1792_p3, %p1786_p0 }
   0x9   :  { %1796 = shalt.err (!%p1793_p4)
}
   0xa   :  { %s1823_s19 = smov [#allocation3]  }
   0xb   :  { %20 = dma.vmem_to_smem %s18_s17, 64, %s1823_s19, [#allocation5]  }
   0xc   :  { %1819 = dma.done.wait [#allocation5], 64  }
   0xd   :  { %1820 = vsyncadd [#allocation5], 4294967232 }
   0xe   :  { %30 = sfence }
   0xf   :  { %v1868_v0 = vld [vmem:[%s2762_s1] sm:$0xff]  ;;  %v51_v1 = vlaneseq  ;;  %v2766_v2 = vmov 0.0   ;;  %v1825_v3 = vmov 1983009808   ;;  %v34_v5 = vld [vmem:[%s2762_s1 + $0x8] sm:$0x3f] }
  0x10   :  { %31 = vst [vmem:[#allocation2] sm:$0x3] %v2766_v2  ;;  %32 = vst [vmem:[#allocation2 + $0xe] sm:$0x3] %v2766_v2  ;;  %v90_v4 = vunpack.c.l.s4 %v1825_v3  ;;  %vm36_vm0 = vcmask 1041408   ;;  %vm37_vm1 = vcmask 1043458   ;;  %v681_v36 = vcombine.high %v1868_v0, %v1868_v0 }
  0x11   :  { %35 = vst [vmem:[#allocation2 + $0x2] sm:$0xff] %v1868_v0  ;;  %v1876_v6 = vshrl.u32 %v51_v1, 7  ;;  %vm38_vm2 = vmor %vm37_vm1, %vm36_vm0  ;;  %vm39_vm3 = vcmask 128004   ;;  %s1826_s23 = smov 28   ;;  %s1827_s1 = smov 29   ;;  %v1138_v14 = vld [vmem:[%s2764_s3 + $0x80] sm:$0xff] }
  0x12   :  { %v91_v7 = vunpack.c.0.s8 %v90_v4  ;;  %vm40_vm4 = vmor %vm39_vm3, %vm38_vm2  ;;  %s1889_s24 = sld [smem:[#allocation3 + $0x81]]  ;;  %v1139_v15 = vld [vmem:[%s2764_s3 + $0x88] sm:$0xff]  ;;  %v1122_v16 = vld [vmem:[%s2764_s3] sm:$0xff]  ;;  %s1828_s19 = smov 27   ;;  %vm257_vm5 = vcmask 228352   ;;  %vm135_vm6 = vcmask 236544  }
  0x13   :  { %41 = vst.msk [vmem:[#allocation2 + $0xa] sm:$0x3f] %vm40_vm4, %v34_v5  ;;  %v1123_v17 = vld [vmem:[%s2764_s3 + $0x8] sm:$0xff]  ;;  %v1661_v18 = vpack.c.bf16 %v1139_v15, %v1138_v14  ;;  %v1140_v19 = vld [vmem:[%s2764_s3 + $0x90] sm:$0xff]  ;;  %v1141_v20 = vld [vmem:[%s2764_s3 + $0x98] sm:$0xff]  ;;  %s1829_s29 = smov 1  }
  0x14   :  { %v1879_v8 = vsub.s32 %v91_v7, %v1876_v6  ;;  %v1531_v21 = vld [vmem:[%s2763_s2 + $0x4] ss:$8 sm:$0xf]  ;;  %v1663_v22 = vpack.c.bf16 %v1123_v17, %v1122_v16  ;;  %v1665_v28 = vpack.c.bf16 %v1141_v20, %v1140_v19  ;;  %v1950_v37 = vsub.s32 0, %v1876_v6  ;;  %s1995_s15 = sld [smem:[#allocation3]]  ;;  %s1830_s21 = smov 127  }
  0x15   :  { %v1124_v23 = vld [vmem:[%s2764_s3 + $0x10] sm:$0xff]  ;;  %v1125_v24 = vld [vmem:[%s2764_s3 + $0x18] sm:$0xff]  ;;  %v1142_v26 = vld [vmem:[%s2764_s3 + $0xa0] sm:$0xff]  ;;  %1662 = vmatprep.subr.bf16.mxu0 %v1661_v18  ;;  %v1953_v38 = vsub.s32 1, %v1876_v6  ;;  %s2007_s0 = sld [smem:[#allocation3 + $0x1]]  ;;  %s1831_s10 = smov 101  }
  0x16   :  { %v1532_v25 = vld [vmem:[%s2763_s2 + $0x4] ss:$8 sm:$0x70]  ;;  %v1936_v29 = vrot.slane %v1868_v0, %v1879_v8  ;;  %1664 = vmatpush3.bf16.msra.mxu0 %v1663_v22  ;;  %v1667_v30 = vpack.c.bf16 %v1125_v24, %v1124_v23  ;;  %v1145_v41 = vld [vmem:[%s2764_s3 + $0xb8] sm:$0xff]  ;;  %v1981_v49 = vrot.slane %v681_v36, %v1879_v8  ;;  %v2063_v20 = vsub.s32 2, %v1876_v6  ;;  %s1832_s9 = smov 100  }
  0x17   :  { %v1143_v27 = vld [vmem:[%s2764_s3 + $0xa8] sm:$0xff]  ;;  %v537_v31 = vor.u32 %v1532_v25, %v1531_v21  ;;  %1666 = vmatprep.subr.bf16.mxu0 %v1665_v28  ;;  %v1126_v34 = vld [vmem:[%s2764_s3 + $0x20] sm:$0xff]  ;;  %v1144_v40 = vld [vmem:[%s2764_s3 + $0xb0] sm:$0xff]  ;;  %v2066_v21 = vsub.s32 3, %v1876_v6  ;;  %s1833_s16 = smov 99   ;;  %s1527_s17 = sld [smem:[#allocation3 + $0x80]] }
  0x18   :  { %v168_v9 = vld [vmem:[#allocation2] sm:$0xff]  ;;  %v540_v32 = vstv %s1889_s24  ;;  %v1669_v33 = vpack.c.bf16 %v1143_v27, %v1142_v26  ;;  %v1127_v35 = vld [vmem:[%s2764_s3 + $0x28] sm:$0xff]  ;;  %v1965_v42 = vcombine.high %v1936_v29, %v1936_v29  ;;  %v1673_v46 = vpack.c.bf16 %v1145_v41, %v1144_v40  ;;  %v1128_v47 = vld [vmem:[%s2764_s3 + $0x30] sm:$0xff]  ;;  %s2152_s26 = sld [smem:[#allocation3 + $0x82]] }
  0x19   :  { %v217_v10 = vrot.slane %v168_v9, %v1879_v8  ;;  %v210_v11 = vcombine.high %v168_v9, %v168_v9  ;;  %v1955_v39 = vmul.f32 %v540_v32, %v537_v31  ;;  %v1671_v44 = vpack.c.bf16 %v1127_v35, %v1126_v34  ;;  %v1129_v48 = vld [vmem:[%s2764_s3 + $0x38] sm:$0xff]  ;;  %v1146_v52 = vld [vmem:[%s2764_s3 + $0xc0] sm:$0xff]  ;;  %v1147_v53 = vld [vmem:[%s2764_s3 + $0xc8] sm:$0xff]  ;;  %s1542_s6 = sld [smem:[#allocation3 + $0x102]] }
  0x1a   :  { %1668 = vmatpush3.bf16.msra.mxu0 %v1667_v30  ;;  %v1675_v54 = vpack.c.bf16 %v1129_v48, %v1128_v47  ;;  %v1677_v55 = vpack.c.bf16 %v1147_v53, %v1146_v52  ;;  %v1130_v56 = vld [vmem:[%s2764_s3 + $0x40] sm:$0xff]  ;;  %v1131_v57 = vld [vmem:[%s2764_s3 + $0x48] sm:$0xff]  ;;  %v1148_v58 = vld [vmem:[%s2764_s3 + $0xd0] sm:$0xff]  ;;  %v2102_v40 = vsub.s32 4, %v1876_v6  ;;  %v2105_v41 = vsub.s32 5, %v1876_v6 }
  0x1b   :  { %243 = vrot.lane.b32.xlu1 %v217_v10, %s1826_s23  ;;  %v225_v12 = vcombine.high %v217_v10, %v217_v10  ;;  %121 = vrot.lane.b32.xlu0 %v217_v10, %s1827_s1  ;;  %v1887_v13 = vrot.slane %v210_v11, %v1879_v8  ;;  %v550_v43 = vrot.slane %v1955_v39, %v1953_v38  ;;  %v1149_v59 = vld [vmem:[%s2764_s3 + $0xd8] sm:$0xff]  ;;  %v44_v61 = vld [vmem:[%s2763_s2] ss:$8 sm:$0x70]  ;;  %vm379_vm7 = vcmask 220160  }
  0x1c   :  { %v546_v45 = vrot.slane %v1955_v39, %v1950_v37  ;;  %1670 = vmatprep.subr.bf16.mxu0 %v1669_v33  ;;  %v43_v60 = vld [vmem:[%s2763_s2] ss:$8 sm:$0xf]  ;;  %v1679_v62 = vpack.c.bf16 %v1131_v57, %v1130_v56  ;;  %v1681_v63 = vpack.c.bf16 %v1149_v59, %v1148_v58  ;;  %v1522_v7 = vld [vmem:[%s2763_s2 + $0x1] ss:$8 sm:$0xf]  ;;  %v170_v22 = vstv %s2007_s0 }
  0x1d   :  { %v1984_v50 = vmul.f32 %v1965_v42, %v550_v43  ;;  %v1132_v0 = vld [vmem:[%s2764_s3 + $0x50] sm:$0xff]  ;;  %v1133_v1 = vld [vmem:[%s2764_s3 + $0x58] sm:$0xff]  ;;  %v45_v3 = vor.u32 %v44_v61, %v43_v60  ;;  %v1150_v4 = vld [vmem:[%s2764_s3 + $0xe0] sm:$0xff]  ;;  %s2085_s0 = sld [smem:[#allocation3 + $0x2]]  ;;  %v2108_v43 = vsub.s32 6, %v1876_v6  ;;  %v2121_v47 = vcombine.high %v1887_v13, %v1887_v13 }
  0x1e   :  { %v1987_v51 = vmul.f32 %v1936_v29, %v546_v45  ;;  %1672 = vmatpush3.bf16.msra.mxu0 %v1671_v44  ;;  %v1151_v5 = vld [vmem:[%s2764_s3 + $0xe8] sm:$0xff]  ;;  %v1683_v11 = vpack.c.bf16 %v1133_v1, %v1132_v0  ;;  %v1134_v14 = vld [vmem:[%s2764_s3 + $0x60] sm:$0xff]  ;;  %v1152_v18 = vld [vmem:[%s2764_s3 + $0xf0] sm:$0xff]  ;;  %v414_v1 = vstv %s1527_s17  ;;  %vm504_vm8 = vcmask 7168  }
  0x1f   :  { %245 = vrot.lane.b32.xlu1 %v225_v12, %s1826_s23  ;;  %123 = vrot.lane.b32.xlu0 %v225_v12, %s1827_s1  ;;  %v1523_v9 = vld [vmem:[%s2763_s2 + $0x1] ss:$8 sm:$0x70]  ;;  %v1153_v19 = vld [vmem:[%s2764_s3 + $0xf8] sm:$0xff]  ;;  %vm728_vm9 = vcmask 1039360   ;;  %vm850_vm10 = vcmask 826368  }
  0x20   :  { %1674 = vmatprep.subr.bf16.mxu0 %v1673_v46  ;;  %v1135_v15 = vld [vmem:[%s2764_s3 + $0x68] sm:$0xff]  ;;  %v167_v16 = vor.u32 %v1523_v9, %v1522_v7  ;;  %v1689_v26 = vpack.c.bf16 %v1153_v19, %v1152_v18  ;;  %v1136_v27 = vld [vmem:[%s2764_s3 + $0x70] sm:$0xff]  ;;  %v1137_v28 = vld [vmem:[%s2764_s3 + $0x78] sm:$0xff]  ;;  %vm972_vm11 = vcmask 818176   ;;  %vm1094_vm12 = vcmask 809984  }
  0x21   :  { %v1687_v23 = vpack.c.bf16 %v1135_v15, %v1134_v14  ;;  %v1691_v31 = vpack.c.bf16 %v1137_v28, %v1136_v27  ;;  %v1525_v34 = vld [vmem:[%s2763_s2 + $0x2] ss:$8 sm:$0xf]  ;;  %v1528_v57 = vld [vmem:[%s2763_s2 + $0x3] ss:$8 sm:$0xf]  ;;  %v558_v27 = vrot.slane %v1955_v39, %v2066_v21  ;;  %v641_v28 = vstv %s2152_s26 }
  0x22   :  { %1676 = vmatpush3.bf16.msra.mxu0 %v1675_v54  ;;  %v2083_v30 = vmul.f32 %v170_v22, %v167_v16  ;;  %v1526_v35 = vld [vmem:[%s2763_s2 + $0x2] ss:$8 sm:$0x70]  ;;  %v1529_v58 = vld [vmem:[%s2763_s2 + $0x3] ss:$8 sm:$0x70]  ;;  %v2178_v22 = vcombine.high %v1981_v49, %v1981_v49 }
  0x23   :  { %247 = vrot.lane.b32.xlu1 %v1887_v13, %s1826_s23  ;;  %125 = vrot.lane.b32.xlu0 %v1887_v13, %s1827_s1  ;;  %v47_v36 = vld [vmem:[#allocation2 + $0x8] sm:$0x3f]  ;;  %v289_v46 = vor.u32 %v1526_v35, %v1525_v34  ;;  %v292_v53 = vstv %s2085_s0  ;;  %v411_v0 = vor.u32 %v1529_v58, %v1528_v57  ;;  %v1538_v57 = vld [vmem:[%s2763_s2 + $0x6] ss:$8 sm:$0x70]  ;;  %vm1835_vm13 = vmmov 0  }
  0x24   :  { %1678 = vmatprep.subr.bf16.mxu0 %v1677_v55  ;;  %v184_v32 = vrot.slane %v2083_v30, %v2063_v20  ;;  %v188_v33 = vrot.slane %v2083_v30, %v2066_v21  ;;  %v112_v45 = vrot.slane %v47_v36, %v1879_v8  ;;  %v169_v6 = vld [vmem:[#allocation2 + $0x8] sm:$0x3f]  ;;  %v200_v52 = vrot.slane %v2083_v30, %v2108_v43  ;;  %v1178_v2 = vld [vmem:[%s2764_s3 + $0x1c0] sm:$0xff] }
  0x25   :  { %v192_v54 = vrot.slane %v2083_v30, %v2102_v40  ;;  %v234_v55 = vrot.slane %v169_v6, %v1879_v8  ;;  %v2136_v56 = vmul.f32 %v292_v53, %v289_v46  ;;  %v227_v61 = vcombine.high %v169_v6, %v169_v6  ;;  %v1535_v14 = vld [vmem:[%s2763_s2 + $0x5] ss:$8 sm:$0x70] }
  0x26   :  { %1680 = vmatpush3.bf16.msra.mxu0 %v1679_v62  ;;  %v413_v6 = vld [vmem:[#allocation2 + $0x8] sm:$0xff]  ;;  %vm1220_vm14 = vcmask 130048   ;;  %vm1504_vm15 = vcmask 74752  }
  0x27   :  { %369 = vrot.lane.b32.xlu1 %v1887_v13, %s1828_s19  ;;  %367 = vrot.lane.b32.xlu0 %v225_v12, %s1828_s19  ;;  %v306_v59 = vrot.slane %v2136_v56, %v2063_v20  ;;  %v310_v60 = vrot.slane %v2136_v56, %v2066_v21  ;;  %v241_v7 = vrot.slane %v227_v61, %v1879_v8 }
  0x28   :  { %1682 = vmatprep.subr.bf16.mxu0 %v1681_v63  ;;  %v120_v63 = vcombine.high %v112_v45, %v112_v45  ;;  %v242_v9 = vcombine.high %v234_v55, %v234_v55 }
  0x2a   :  { %1684 = vmatpush3.bf16.msra.mxu0 %v1683_v11  ;;  %v2163_v11 = vmul.f32 %v414_v1, %v411_v0  ;;  %v471_v0 = vcombine.high %v413_v6, %v413_v6 }
  0x2b   :  { %490 = vrot.lane.b32.xlu1 %v225_v12, %s1829_s29  ;;  %365 = vrot.lane.b32.xlu0 %v217_v10, %s1828_s19  ;;  %v1685_v12 = vpack.c.bf16 %v1151_v5, %v1150_v4  ;;  %v314_v4 = vrot.slane %v2136_v56, %v2102_v40  ;;  %v318_v5 = vrot.slane %v2136_v56, %v2105_v41 }
  0x2c   :  { %v428_v15 = vrot.slane %v2163_v11, %v2063_v20  ;;  %v432_v16 = vrot.slane %v2163_v11, %v2066_v21  ;;  %v420_v34 = vrot.slane %v2163_v11, %v1950_v37 }
  0x2d   :  { %1686 = vmatprep.subr.bf16.mxu0 %v1685_v12  ;;  %v1534_v12 = vld [vmem:[%s2763_s2 + $0x5] ss:$8 sm:$0xf] }
  0x2e   :  { %1688 = vmatpush3.bf16.msra.mxu0 %v1687_v23  ;;  %v638_v23 = vor.u32 %v1535_v14, %v1534_v12 }
  0x2f   :  { %488 = vrot.lane.b32.xlu1 %v217_v10, %s1829_s29  ;;  %492 = vrot.lane.b32.xlu0 %v1887_v13, %s1829_s29  ;;  %v48_v10 = vstv %s1995_s15  ;;  %v105_v13 = vcombine.high %v47_v36, %v47_v36  ;;  %v2197_v36 = vmul.f32 %v2178_v22, %v558_v27  ;;  %v1172_v27 = vld [vmem:[%s2764_s3 + $0x190] sm:$0xff] }
  0x30   :  { %v2054_v17 = vmul.f32 %v48_v10, %v45_v3  ;;  %1690 = vmatprep.subr.bf16.mxu0 %v1689_v26  ;;  %v322_v3 = vrot.slane %v2136_v56, %v2108_v43  ;;  %v291_v10 = vld [vmem:[#allocation2 + $0x8] sm:$0x3f]  ;;  %v554_v26 = vrot.slane %v1955_v39, %v2063_v20  ;;  %v2203_v53 = vmul.f32 %v641_v28, %v638_v23  ;;  %v1173_v28 = vld [vmem:[%s2764_s3 + $0x198] sm:$0xff] }
  0x31   :  { %v119_v62 = vrot.slane %v105_v13, %v1879_v8  ;;  %v356_v18 = vrot.slane %v291_v10, %v1879_v8  ;;  %v349_v19 = vcombine.high %v291_v10, %v291_v10  ;;  %v1537_v13 = vld [vmem:[%s2763_s2 + $0x6] ss:$8 sm:$0xf]  ;;  %v478_v10 = vrot.slane %v413_v6, %v1879_v8 }
  0x32   :  { %v62_v24 = vrot.slane %v2054_v17, %v2063_v20  ;;  %v66_v25 = vrot.slane %v2054_v17, %v2066_v21  ;;  %1692 = vmatpush3.bf16.msra.mxu0 %v1691_v31  ;;  %v70_v44 = vrot.slane %v2054_v17, %v2102_v40  ;;  %v78_v48 = vrot.slane %v2054_v17, %v2108_v43 }
  0x33   :  { %718 = vrot.lane.b32.xlu1 %v1981_v49, %s1830_s21  ;;  %716 = vrot.lane.b32.xlu0 %v1965_v42, %s1830_s21  ;;  %v2194_v35 = vmul.f32 %v1981_v49, %v554_v26  ;;  %v364_v46 = vcombine.high %v356_v18, %v356_v18  ;;  %v760_v12 = vor.u32 %v1538_v57, %v1537_v13  ;;  %v1203_v57 = vld [vmem:[%s2764_s3 + $0x288] sm:$0xff] }
  0x34   :  { %v486_v6 = vcombine.high %v478_v10, %v478_v10  ;;  %v1697_v13 = vpack.c.bf16 %v1173_v28, %v1172_v27  ;;  %v1159_v28 = vld [vmem:[%s2764_s3 + $0x128] sm:$0xff]  ;;  %v424_v31 = vrot.slane %v2163_v11, %v1953_v38 }
  0x37   :  { %838 = vrot.lane.b32.xlu1 %v1965_v42, %s1831_s10  ;;  %714 = vrot.lane.b32.xlu0 %v1936_v29, %s1830_s21 }
  0x3b   :  { %836 = vrot.lane.b32.xlu1 %v1936_v29, %s1831_s10  ;;  %840 = vrot.lane.b32.xlu0 %v1981_v49, %s1831_s10 }
  0x3f   :  { %962 = vrot.lane.b32.xlu1 %v1981_v49, %s1832_s9  ;;  %960 = vrot.lane.b32.xlu0 %v1965_v42, %s1832_s9 }
  0x43   :  { %1082 = vrot.lane.b32.xlu1 %v1965_v42, %s1833_s16  ;;  %958 = vrot.lane.b32.xlu0 %v1936_v29, %s1832_s9  ;;  %v74_v42 = vrot.slane %v2054_v17, %v2105_v41 }
  0x47   :  { %1080 = vrot.lane.b32.xlu1 %v1936_v29, %s1833_s16  ;;  %1084 = vrot.lane.b32.xlu0 %v1981_v49, %s1833_s16  ;;  %v196_v29 = vrot.slane %v2083_v30, %v2105_v41 }
  0x4b   :  { %129 = vrot.lane.b32.xlu1 %v112_v45, %s1827_s1  ;;  %127 = vrot.lane.b32.xlu0 %v2121_v47, %s1827_s1  ;;  %v363_v45 = vrot.slane %v349_v19, %v1879_v8 }
  0x4f   :  { %251 = vrot.lane.b32.xlu1 %v234_v55, %s1826_s23  ;;  %249 = vrot.lane.b32.xlu0 %v2121_v47, %s1826_s23  ;;  %v562_v55 = vrot.slane %v1955_v39, %v2102_v40 }
  0x53   :  { %133 = vrot.lane.b32.xlu1 %v119_v62, %s1827_s1  ;;  %131 = vrot.lane.b32.xlu0 %v120_v63, %s1827_s1  ;;  %s2187_s1 = sld [smem:[#allocation3 + $0x100]]  ;;  %v1170_v62 = vld [vmem:[%s2764_s3 + $0x180] sm:$0xff]  ;;  %v1171_v63 = vld [vmem:[%s2764_s3 + $0x188] sm:$0xff] }
  0x54   :  { %v1693_v1 = vpack.c.bf16 %v1171_v63, %v1170_v62  ;;  %v1156_v62 = vld [vmem:[%s2764_s3 + $0x110] sm:$0xff]  ;;  %v1157_v63 = vld [vmem:[%s2764_s3 + $0x118] sm:$0xff] }
  0x56   :  { %1694 = vmatprep.subr.bf16.mxu1 %v1693_v1 }
  0x57   :  { %255 = vrot.lane.b32.xlu1 %v241_v7, %s1826_s23  ;;  %253 = vrot.lane.b32.xlu0 %v242_v9, %s1826_s23  ;;  %v1154_v7 = vld [vmem:[%s2764_s3 + $0x100] sm:$0xff]  ;;  %v1155_v9 = vld [vmem:[%s2764_s3 + $0x108] sm:$0xff] }
  0x58   :  { %v1695_v14 = vpack.c.bf16 %v1155_v9, %v1154_v7  ;;  %v1699_v7 = vpack.c.bf16 %v1157_v63, %v1156_v62  ;;  %v640_v9 = vld [vmem:[#allocation2 + $0xa] sm:$0x3f]  ;;  %v298_v62 = vrot.slane %v2136_v56, %v1950_v37 }
  0x5a   :  { %1696 = vmatpush3.bf16.msra.mxu1 %v1695_v14 }
  0x5b   :  { %373 = vrot.lane.b32.xlu1 %v356_v18, %s1828_s19  ;;  %371 = vrot.lane.b32.xlu0 %v2121_v47, %s1828_s19  ;;  %v763_v18 = vstv %s2187_s1 }
  0x5c   :  { %1698 = vmatprep.subr.bf16.mxu1 %v1697_v13  ;;  %v698_v13 = vcombine.high %v640_v9, %v640_v9 }
  0x5e   :  { %1700 = vmatpush3.bf16.msra.mxu1 %v1699_v7 }
  0x5f   :  { %377 = vrot.lane.b32.xlu1 %v363_v45, %s1828_s19  ;;  %375 = vrot.lane.b32.xlu0 %v364_v46, %s1828_s19  ;;  %v1202_v45 = vld [vmem:[%s2764_s3 + $0x280] sm:$0xff]  ;;  %v2251_v46 = vrot.slane %v471_v0, %v1879_v8  ;;  %v2265_v0 = vmul.f32 %v763_v18, %v760_v12 }
  0x60   :  { %v1725_v1 = vpack.c.bf16 %v1203_v57, %v1202_v45  ;;  %v1158_v18 = vld [vmem:[%s2764_s3 + $0x120] sm:$0xff]  ;;  %v705_v45 = vrot.slane %v640_v9, %v1879_v8  ;;  %v1160_v9 = vld [vmem:[%s2764_s3 + $0x130] sm:$0xff] }
  0x61   :  { %v1703_v57 = vpack.c.bf16 %v1159_v28, %v1158_v18  ;;  %v762_v28 = vld [vmem:[#allocation2 + $0xa] sm:$0x3f]  ;;  %v302_v18 = vrot.slane %v2136_v56, %v1953_v38 }
  0x62   :  { %1726 = vmatprep.subr.bf16.mxu0 %v1725_v1  ;;  %v1176_v1 = vld [vmem:[%s2764_s3 + $0x1b0] sm:$0xff] }
  0x63   :  { %496 = vrot.lane.b32.xlu1 %v478_v10, %s1829_s29  ;;  %494 = vrot.lane.b32.xlu0 %v2121_v47, %s1829_s29  ;;  %v1174_v10 = vld [vmem:[%s2764_s3 + $0x1a0] sm:$0xff]  ;;  %v1175_v47 = vld [vmem:[%s2764_s3 + $0x1a8] sm:$0xff] }
  0x64   :  { %v1701_v12 = vpack.c.bf16 %v1175_v47, %v1174_v10  ;;  %v1161_v10 = vld [vmem:[%s2764_s3 + $0x138] sm:$0xff]  ;;  %v712_v47 = vrot.slane %v698_v13, %v1879_v8 }
  0x66   :  { %1702 = vmatprep.subr.bf16.mxu1 %v1701_v12  ;;  %v713_v12 = vcombine.high %v705_v45, %v705_v45 }
  0x67   :  { %500 = vrot.lane.b32.xlu1 %v2251_v46, %s1829_s29  ;;  %498 = vrot.lane.b32.xlu0 %v486_v6, %s1829_s29  ;;  %v1177_v6 = vld [vmem:[%s2764_s3 + $0x1b8] sm:$0xff] }
  0x68   :  { %1704 = vmatpush3.bf16.msra.mxu1 %v1703_v57  ;;  %v1705_v7 = vpack.c.bf16 %v1177_v6, %v1176_v1  ;;  %v1707_v57 = vpack.c.bf16 %v1161_v10, %v1160_v9  ;;  %v1163_v9 = vld [vmem:[%s2764_s3 + $0x148] sm:$0xff]  ;;  %v827_v10 = vrot.slane %v762_v28, %v1879_v8 }
  0x6a   :  { %1706 = vmatprep.subr.bf16.mxu1 %v1705_v7  ;;  %v1162_v7 = vld [vmem:[%s2764_s3 + $0x140] sm:$0xff] }
  0x6b   :  { %722 = vrot.lane.b32.xlu1 %v705_v45, %s1830_s21  ;;  %720 = vrot.lane.b32.xlu0 %v2178_v22, %s1830_s21  ;;  %v1179_v45 = vld [vmem:[%s2764_s3 + $0x1c8] sm:$0xff]  ;;  %v1711_v1 = vpack.c.bf16 %v1163_v9, %v1162_v7  ;;  %v487_v7 = vcombine.high %v2251_v46, %v2251_v46  ;;  %v1182_v9 = vld [vmem:[%s2764_s3 + $0x1e0] sm:$0xff] }
  0x6c   :  { %1708 = vmatpush3.bf16.msra.mxu1 %v1707_v57  ;;  %v1709_v13 = vpack.c.bf16 %v1179_v45, %v1178_v2  ;;  %v1180_v2 = vld [vmem:[%s2764_s3 + $0x1d0] sm:$0xff]  ;;  %v1181_v57 = vld [vmem:[%s2764_s3 + $0x1d8] sm:$0xff]  ;;  %v820_v45 = vcombine.high %v762_v28, %v762_v28  ;;  %v1167_v46 = vld [vmem:[%s2764_s3 + $0x168] sm:$0xff] }
  0x6d   :  { %v1713_v6 = vpack.c.bf16 %v1181_v57, %v1180_v2  ;;  %v1183_v2 = vld [vmem:[%s2764_s3 + $0x1e8] sm:$0xff] }
  0x6e   :  { %1710 = vmatprep.subr.bf16.mxu1 %v1709_v13  ;;  %v835_v13 = vcombine.high %v827_v10, %v827_v10  ;;  %v1717_v57 = vpack.c.bf16 %v1183_v2, %v1182_v9  ;;  %v1185_v9 = vld [vmem:[%s2764_s3 + $0x1f8] sm:$0xff] }
  0x6f   :  { %726 = vrot.lane.b32.xlu1 %v712_v47, %s1830_s21  ;;  %724 = vrot.lane.b32.xlu0 %v713_v12, %s1830_s21  ;;  %v1164_v47 = vld [vmem:[%s2764_s3 + $0x150] sm:$0xff]  ;;  %v1165_v12 = vld [vmem:[%s2764_s3 + $0x158] sm:$0xff] }
  0x70   :  { %1712 = vmatpush3.bf16.msra.mxu1 %v1711_v1  ;;  %v1715_v28 = vpack.c.bf16 %v1165_v12, %v1164_v47  ;;  %v884_v1 = vld [vmem:[#allocation2 + $0xa] sm:$0x3f] }
  0x71   :  { %1714 = vmatprep.subr.bf16.mxu1 %v1713_v6  ;;  %v834_v6 = vrot.slane %v820_v45, %v1879_v8  ;;  %v949_v47 = vrot.slane %v884_v1, %v1879_v8  ;;  %v1169_v45 = vld [vmem:[%s2764_s3 + $0x178] sm:$0xff] }
  0x73   :  { %844 = vrot.lane.b32.xlu1 %v827_v10, %s1831_s10  ;;  %842 = vrot.lane.b32.xlu0 %v2178_v22, %s1831_s10  ;;  %v1166_v10 = vld [vmem:[%s2764_s3 + $0x160] sm:$0xff] }
  0x74   :  { %1716 = vmatpush3.bf16.msra.mxu1 %v1715_v28  ;;  %v1719_v12 = vpack.c.bf16 %v1167_v46, %v1166_v10  ;;  %v1184_v28 = vld [vmem:[%s2764_s3 + $0x1f0] sm:$0xff]  ;;  %v1006_v46 = vld [vmem:[#allocation2 + $0xa] sm:$0x3f] }
  0x75   :  { %1718 = vmatprep.subr.bf16.mxu1 %v1717_v57  ;;  %v1721_v2 = vpack.c.bf16 %v1185_v9, %v1184_v28  ;;  %v942_v57 = vcombine.high %v884_v1, %v884_v1  ;;  %v1071_v28 = vrot.slane %v1006_v46, %v1879_v8  ;;  %v1834_v9 = vmov 0.0|0.0  }
  0x77   :  { %846 = vrot.lane.b32.xlu1 %v835_v13, %s1831_s10  ;;  %502 = vrot.lane.b32.xlu0 %v487_v7, %s1829_s29  ;;  %v1168_v13 = vld [vmem:[%s2764_s3 + $0x170] sm:$0xff]  ;;  %v957_v7 = vcombine.high %v949_v47, %v949_v47  ;;  %v1079_v1 = vcombine.high %v1071_v28, %v1071_v28 }
  0x78   :  { %1720 = vmatpush3.bf16.msra.mxu1 %v1719_v12  ;;  %v1723_v10 = vpack.c.bf16 %v1169_v45, %v1168_v13  ;;  %v956_v12 = vrot.slane %v942_v57, %v1879_v8 }
  0x79   :  { %1722 = vmatprep.subr.bf16.mxu1 %v1721_v2 }
  0x7b   :  { %964 = vrot.lane.b32.xlu1 %v2178_v22, %s1832_s9  ;;  %848 = vrot.lane.b32.xlu0 %v834_v6, %s1831_s10  ;;  %v1064_v6 = vcombine.high %v1006_v46, %v1006_v46  ;;  %v54_v46 = vrot.slane %v2054_v17, %v1950_v37  ;;  %s2418_s10 = sld [smem:[#allocation3 + $0x101]] }
  0x7c   :  { %1724 = vmatpush3.bf16.msra.mxu1 %v1723_v10 }
  0x7d   :  { %1757 = vmatprep.subr.bf16.mxu1 %v1834_v9  ;;  %v1078_v2 = vrot.slane %v1064_v6, %v1879_v8 }
  0x7f   :  { %968 = vrot.lane.b32.xlu1 %v957_v7, %s1832_s9  ;;  %966 = vrot.lane.b32.xlu0 %v949_v47, %s1832_s9 }
  0x83   :  { %1086 = vrot.lane.b32.xlu1 %v2178_v22, %s1833_s16  ;;  %970 = vrot.lane.b32.xlu0 %v956_v12, %s1832_s9  ;;  %v176_v22 = vrot.slane %v2083_v30, %v1950_v37  ;;  %v180_v12 = vrot.slane %v2083_v30, %v1953_v38 }
  0x87   :  { %1090 = vrot.lane.b32.xlu1 %v1079_v1, %s1833_s16  ;;  %1088 = vrot.lane.b32.xlu0 %v1071_v28, %s1833_s16  ;;  %v58_v28 = vrot.slane %v2054_v17, %v1953_v38  ;;  %v1195_v17 = vld [vmem:[%s2764_s3 + $0x248] sm:$0xff] }
  0x8b   :  { %1092 = vrot.lane.b32.xlu0 %v1078_v2, %s1833_s16 }
  0x8d   :  { %v244_v47 = vpop.permute.xlu1 %243  ;;  %v122_v13 = vpop.permute.xlu0 %121 }
  0x91   :  { %v246_v45 = vpop.permute.xlu1 %245  ;;  %v124_v7 = vpop.permute.xlu0 %123 }
  0x92   :  { %v258_v6 = vsel %vm257_vm5, %v244_v47, %v246_v45  ;;  %v136_v2 = vsel %vm135_vm6, %v122_v13, %v124_v7 }
  0x93   :  { %v271_v14 = vmul.f32 %v258_v6, %v176_v22  ;;  %v149_v26 = vmul.f32 %v136_v2, %v54_v46 }
  0x95   :  { %v2387_v57 = vpop.permute.xlu1 %247  ;;  %v2389_v10 = vpop.permute.xlu0 %125  ;;  %v278_v49 = vadd.f32 %v271_v14, %v149_v26  ;;  %v1541_v26 = vld [vmem:[%s2763_s2 + $0x7] ss:$8 sm:$0x70] }
  0x96   :  { %v259_v19 = vsel %vm257_vm5, %v246_v45, %v2387_v57  ;;  %v137_v63 = vsel %vm135_vm6, %v124_v7, %v2389_v10 }
  0x97   :  { %v272_v47 = vmul.f32 %v259_v19, %v180_v12  ;;  %v150_v23 = vmul.f32 %v137_v63, %v58_v28 }
  0x99   :  { %v2399_v9 = vpop.permute.xlu1 %369  ;;  %v368_v1 = vpop.permute.xlu0 %367  ;;  %v279_v22 = vadd.f32 %v272_v47, %v150_v23  ;;  %v1540_v23 = vld [vmem:[%s2763_s2 + $0x7] ss:$8 sm:$0xf] }
  0x9a   :  { %v381_v27 = vsel %vm379_vm7, %v368_v1, %v2399_v9 }
  0x9b   :  { %v394_v58 = vmul.f32 %v381_v27, %v302_v18  ;;  %v651_v27 = vrot.slane %v2203_v53, %v1953_v38 }
  0x9d   :  { %v491_v13 = vpop.permute.xlu1 %490  ;;  %v366_v61 = vpop.permute.xlu0 %365 }
  0x9e   :  { %v380_v45 = vsel %vm379_vm7, %v366_v61, %v368_v1 }
  0x9f   :  { %v393_v7 = vmul.f32 %v380_v45, %v298_v62  ;;  %v401_v62 = vadd.f32 %v394_v58, %v279_v22  ;;  %v885_v45 = vstv %s2418_s10 }
  0xa1   :  { %v489_v46 = vpop.permute.xlu1 %488  ;;  %v2420_v19 = vpop.permute.xlu0 %492  ;;  %v400_v18 = vadd.f32 %v393_v7, %v278_v49 }
  0xa2   :  { %v505_v63 = vsel %vm504_vm8, %v489_v46, %v491_v13  ;;  %v506_v61 = vsel %vm504_vm8, %v491_v13, %v2420_v19  ;;  %v882_v13 = vor.u32 %v1541_v26, %v1540_v23 }
  0xa3   :  { %v519_v12 = vmul.f32 %v505_v63, %v420_v34  ;;  %v520_v28 = vmul.f32 %v506_v61, %v424_v31  ;;  %v647_v34 = vrot.slane %v2203_v53, %v1950_v37 }
  0xa5   :  { %v526_v14 = vadd.f32 %v519_v12, %v400_v18  ;;  %v527_v1 = vadd.f32 %v520_v28, %v401_v62  ;;  %v2433_v6 = vpop.permute.xlu1 %718  ;;  %v717_v2 = vpop.permute.xlu0 %716  ;;  %v769_v62 = vrot.slane %v2265_v0, %v1950_v37  ;;  %v773_v18 = vrot.slane %v2265_v0, %v1953_v38 }
  0xa6   :  { %v730_v58 = vsel %vm728_vm9, %v717_v2, %v2433_v6 }
  0xa7   :  { %v628_v31 = vadd.f32 %v1984_v50, %v527_v1  ;;  %v743_v49 = vmul.f32 %v730_v58, %v651_v27  ;;  %v627_v47 = vadd.f32 %v1987_v51, %v526_v14  ;;  %v2447_v50 = vmul.f32 %v885_v45, %v882_v13  ;;  %v1543_v51 = vld [vmem:[%s2763_s2 + $0x38] ss:$8 sm:$0xf] }
  0xa8   :  { %v1544_v27 = vld [vmem:[%s2763_s2 + $0x38] ss:$8 sm:$0x70] }
  0xa9   :  { %v750_v7 = vadd.f32 %v743_v49, %v628_v31  ;;  %v839_v22 = vpop.permute.xlu1 %838  ;;  %v715_v46 = vpop.permute.xlu0 %714  ;;  %v895_v58 = vrot.slane %v2447_v50, %v1953_v38  ;;  %v1007_v31 = vstv %s1542_s6 }
  0xaa   :  { %v729_v63 = vsel %vm728_vm9, %v715_v46, %v717_v2 }
  0xab   :  { %v742_v61 = vmul.f32 %v729_v63, %v647_v34  ;;  %v1004_v34 = vor.u32 %v1544_v27, %v1543_v51 }
  0xad   :  { %v749_v12 = vadd.f32 %v742_v61, %v627_v47  ;;  %v837_v28 = vpop.permute.xlu1 %836  ;;  %v2455_v23 = vpop.permute.xlu0 %840  ;;  %v2468_v61 = vmul.f32 %v1007_v31, %v1004_v34  ;;  %v1186_v34 = vld [vmem:[%s2764_s3 + $0x200] sm:$0xff] }
  0xae   :  { %v851_v26 = vsel %vm850_vm10, %v837_v28, %v839_v22  ;;  %v852_v14 = vsel %vm850_vm10, %v839_v22, %v2455_v23  ;;  %v891_v22 = vrot.slane %v2447_v50, %v1950_v37 }
  0xaf   :  { %v864_v1 = vmul.f32 %v851_v26, %v769_v62  ;;  %v865_v2 = vmul.f32 %v852_v14, %v773_v18 }
  0xb1   :  { %v871_v49 = vadd.f32 %v864_v1, %v749_v12  ;;  %v2462_v13 = vpop.permute.xlu1 %962  ;;  %v961_v47 = vpop.permute.xlu0 %960  ;;  %v872_v45 = vadd.f32 %v865_v2, %v750_v7  ;;  %v1013_v12 = vrot.slane %v2468_v61, %v1950_v37  ;;  %v1017_v7 = vrot.slane %v2468_v61, %v1953_v38  ;;  %v1187_v37 = vld [vmem:[%s2764_s3 + $0x208] sm:$0xff]  ;;  %v1204_v38 = vld [vmem:[%s2764_s3 + $0x290] sm:$0xff] }
  0xb2   :  { %v974_v46 = vsel %vm972_vm11, %v961_v47, %v2462_v13 }
  0xb3   :  { %v987_v63 = vmul.f32 %v974_v46, %v895_v58 }
  0xb5   :  { %v1083_v62 = vpop.permute.xlu1 %1082  ;;  %v959_v18 = vpop.permute.xlu0 %958  ;;  %v994_v28 = vadd.f32 %v987_v63, %v872_v45 }
  0xb6   :  { %v973_v51 = vsel %vm972_vm11, %v959_v18, %v961_v47 }
  0xb7   :  { %v986_v27 = vmul.f32 %v973_v51, %v891_v22 }
  0xb9   :  { %v993_v26 = vadd.f32 %v986_v27, %v871_v49  ;;  %v1081_v14 = vpop.permute.xlu1 %1080  ;;  %v2475_v1 = vpop.permute.xlu0 %1084  ;;  %v1205_v49 = vld [vmem:[%s2764_s3 + $0x298] sm:$0xff] }
  0xba   :  { %v1095_v2 = vsel %vm1094_vm12, %v1081_v14, %v1083_v62  ;;  %v1096_v58 = vsel %vm1094_vm12, %v1083_v62, %v2475_v1  ;;  %v1727_v62 = vpack.c.bf16 %v1187_v37, %v1186_v34  ;;  %v1729_v27 = vpack.c.bf16 %v1205_v49, %v1204_v38  ;;  %v1207_v14 = vld [vmem:[%s2764_s3 + $0x2a8] sm:$0xff]  ;;  %v1208_v49 = vld [vmem:[%s2764_s3 + $0x2b0] sm:$0xff] }
  0xbb   :  { %v1108_v31 = vmul.f32 %v1095_v2, %v1013_v12  ;;  %v1109_v47 = vmul.f32 %v1096_v58, %v1017_v7  ;;  %v1188_v12 = vld [vmem:[%s2764_s3 + $0x210] sm:$0xff]  ;;  %v1189_v7 = vld [vmem:[%s2764_s3 + $0x218] sm:$0xff] }
  0xbc   :  { %v1731_v34 = vpack.c.bf16 %v1189_v7, %v1188_v12  ;;  %v1192_v12 = vld [vmem:[%s2764_s3 + $0x230] sm:$0xff]  ;;  %v1193_v7 = vld [vmem:[%s2764_s3 + $0x238] sm:$0xff] }
  0xbd   :  { %v130_v45 = vpop.permute.xlu1 %129  ;;  %v128_v46 = vpop.permute.xlu0 %127  ;;  %v1116_v63 = vadd.f32 %v1109_v47, %v994_v28  ;;  %v1115_v22 = vadd.f32 %v1108_v31, %v993_v26  ;;  %v1190_v31 = vld [vmem:[%s2764_s3 + $0x220] sm:$0xff]  ;;  %v1191_v47 = vld [vmem:[%s2764_s3 + $0x228] sm:$0xff] }
  0xbe   :  { %v138_v18 = vsel %vm135_vm6, %v2389_v10, %v128_v46  ;;  %v139_v51 = vsel %vm135_vm6, %v128_v46, %v130_v45  ;;  %v1206_v10 = vld [vmem:[%s2764_s3 + $0x2a0] sm:$0xff]  ;;  %v1209_v46 = vld [vmem:[%s2764_s3 + $0x2b8] sm:$0xff] }
  0xbf   :  { %v151_v28 = vmul.f32 %v138_v18, %v62_v24  ;;  %v152_v26 = vmul.f32 %v139_v51, %v66_v25  ;;  %1288 = vmatprep.mubr.f32.mxu0 %v1116_v63  ;;  %v1733_v25 = vpack.c.bf16 %v1207_v14, %v1206_v10  ;;  %v1735_v51 = vpack.c.bf16 %v1191_v47, %v1190_v31  ;;  %v1211_v10 = vld [vmem:[%s2764_s3 + $0x2c8] sm:$0xff]  ;;  %v1194_v31 = vld [vmem:[%s2764_s3 + $0x240] sm:$0xff]  ;;  %v1213_v47 = vld [vmem:[%s2764_s3 + $0x2d8] sm:$0xff] }
  0xc0   :  { %1289 = vmatmul.mubr.f32.vlgmr.msra.gmra.mrb[0].mxu0 %v1115_v22 }
  0xc1   :  { %v252_v2 = vpop.permute.xlu1 %251  ;;  %v250_v58 = vpop.permute.xlu0 %249  ;;  %1728 = vmatpush3.bf16.msra.mxu0 %v1727_v62 }
  0xc2   :  { %v260_v24 = vsel %vm257_vm5, %v2387_v57, %v250_v58  ;;  %v261_v37 = vsel %vm257_vm5, %v250_v58, %v252_v2  ;;  %1730 = vmatprep.subr.bf16.mxu0 %v1729_v27 }
  0xc3   :  { %v273_v38 = vmul.f32 %v260_v24, %v184_v32  ;;  %v274_v57 = vmul.f32 %v261_v37, %v188_v33  ;;  %v1737_v33 = vpack.c.bf16 %v1209_v46, %v1208_v49 }
  0xc5   :  { %v280_v63 = vadd.f32 %v273_v38, %v151_v28  ;;  %v281_v22 = vadd.f32 %v274_v57, %v152_v26  ;;  %v134_v62 = vpop.permute.xlu1 %133  ;;  %v132_v18 = vpop.permute.xlu0 %131  ;;  %1732 = vmatpush3.bf16.msra.mxu0 %v1731_v34  ;;  %v1210_v26 = vld [vmem:[%s2764_s3 + $0x2c0] sm:$0xff] }
  0xc6   :  { %v140_v32 = vsel %vm135_vm6, %v130_v45, %v132_v18  ;;  %v141_v27 = vsel %vm135_vm6, %v132_v18, %v134_v62  ;;  %1734 = vmatprep.subr.bf16.mxu0 %v1733_v25  ;;  %v155_v14 = vmul.f32 %v134_v62, %v78_v48  ;;  %v1741_v25 = vpack.c.bf16 %v1211_v10, %v1210_v26 }
  0xc7   :  { %v153_v28 = vmul.f32 %v140_v32, %v70_v44  ;;  %v154_v45 = vmul.f32 %v141_v27, %v74_v42  ;;  %v1739_v44 = vpack.c.bf16 %v1193_v7, %v1192_v12  ;;  %v1743_v18 = vpack.c.bf16 %v1195_v17, %v1194_v31  ;;  %v1196_v32 = vld [vmem:[%s2764_s3 + $0x250] sm:$0xff]  ;;  %v1197_v27 = vld [vmem:[%s2764_s3 + $0x258] sm:$0xff]  ;;  %v1214_v12 = vld [vmem:[%s2764_s3 + $0x2e0] sm:$0xff] }
  0xc8   :  { %v1215_v7 = vld [vmem:[%s2764_s3 + $0x2e8] sm:$0xff] }
  0xc9   :  { %v256_v58 = vpop.permute.xlu1 %255  ;;  %v254_v34 = vpop.permute.xlu0 %253  ;;  %1736 = vmatpush3.bf16.msra.mxu0 %v1735_v51 }
  0xca   :  { %v277_v42 = vmul.f32 %v256_v58, %v200_v52  ;;  %v262_v24 = vsel %vm257_vm5, %v252_v2, %v254_v34  ;;  %v263_v37 = vsel %vm257_vm5, %v254_v34, %v256_v58  ;;  %1738 = vmatprep.subr.bf16.mxu0 %v1737_v33  ;;  %v1212_v2 = vld [vmem:[%s2764_s3 + $0x2d0] sm:$0xff] }
  0xcb   :  { %v275_v48 = vmul.f32 %v262_v24, %v192_v54  ;;  %v276_v52 = vmul.f32 %v263_v37, %v196_v29  ;;  %v2583_v29 = vld [vmem:[#allocation2 + $0xa] sm:$0x3f]  ;;  %v1745_v51 = vpack.c.bf16 %v1213_v47, %v1212_v2  ;;  %v1216_v24 = vld [vmem:[%s2764_s3 + $0x2f0] sm:$0xff]  ;;  %v1217_v37 = vld [vmem:[%s2764_s3 + $0x2f8] sm:$0xff] }
  0xcc   :  { %v284_v38 = vadd.f32 %v277_v42, %v155_v14  ;;  %v604_v14 = vrot.slane %v2583_v29, %v1879_v8  ;;  %v1753_v47 = vpack.c.bf16 %v1217_v37, %v1216_v24 }
  0xcd   :  { %v282_v57 = vadd.f32 %v275_v48, %v153_v28  ;;  %v283_v49 = vadd.f32 %v276_v52, %v154_v45  ;;  %v374_v46 = vpop.permute.xlu1 %373  ;;  %v372_v62 = vpop.permute.xlu0 %371  ;;  %1740 = vmatpush3.bf16.msra.mxu0 %v1739_v44  ;;  %v1749_v44 = vpack.c.bf16 %v1215_v7, %v1214_v12  ;;  %v2769_v12 = vrot.slane %v2163_v11, %v2105_v41 }
  0xce   :  { %v382_v54 = vsel %vm379_vm7, %v2399_v9, %v372_v62  ;;  %v383_v30 = vsel %vm379_vm7, %v372_v62, %v374_v46  ;;  %1742 = vmatprep.subr.bf16.mxu0 %v1741_v25  ;;  %v612_v2 = vcombine.high %v604_v14, %v604_v14 }
  0xcf   :  { %v395_v33 = vmul.f32 %v382_v54, %v306_v59  ;;  %v396_v9 = vmul.f32 %v383_v30, %v310_v60  ;;  %v1747_v59 = vpack.c.bf16 %v1197_v27, %v1196_v32  ;;  %v624_v27 = vmul.f32 %v604_v14, %v562_v55 }
  0xd1   :  { %v402_v28 = vadd.f32 %v395_v33, %v280_v63  ;;  %v403_v45 = vadd.f32 %v396_v9, %v281_v22  ;;  %v378_v26 = vpop.permute.xlu1 %377  ;;  %v376_v10 = vpop.permute.xlu0 %375  ;;  %1744 = vmatpush3.bf16.msra.mxu0 %v1743_v18  ;;  %v1198_v63 = vld [vmem:[%s2764_s3 + $0x260] sm:$0xff]  ;;  %v1199_v22 = vld [vmem:[%s2764_s3 + $0x268] sm:$0xff] }
  0xd2   :  { %v399_v60 = vmul.f32 %v378_v26, %v322_v3  ;;  %v384_v58 = vsel %vm379_vm7, %v374_v46, %v376_v10  ;;  %v385_v34 = vsel %vm379_vm7, %v376_v10, %v378_v26  ;;  %1746 = vmatprep.subr.bf16.mxu0 %v1745_v51  ;;  %v1200_v46 = vld [vmem:[%s2764_s3 + $0x270] sm:$0xff] }
  0xd3   :  { %v397_v42 = vmul.f32 %v384_v58, %v314_v4  ;;  %v398_v3 = vmul.f32 %v385_v34, %v318_v5  ;;  %v1751_v4 = vpack.c.bf16 %v1199_v22, %v1198_v63  ;;  %v2770_v58 = vrot.slane %v2203_v53, %v2063_v20 }
  0xd4   :  { %v2628_v25 = vadd.f32 %v399_v60, %v284_v38  ;;  %v1201_v38 = vld [vmem:[%s2764_s3 + $0x278] sm:$0xff] }
  0xd5   :  { %v404_v31 = vadd.f32 %v397_v42, %v282_v57  ;;  %v405_v17 = vadd.f32 %v398_v3, %v283_v49  ;;  %v497_v48 = vpop.permute.xlu1 %496  ;;  %v495_v52 = vpop.permute.xlu0 %494  ;;  %1748 = vmatpush3.bf16.msra.mxu0 %v1747_v59  ;;  %v1755_v30 = vpack.c.bf16 %v1201_v38, %v1200_v46 }
  0xd6   :  { %v507_v56 = vsel %vm504_vm8, %v2420_v19, %v495_v52  ;;  %v508_v5 = vsel %vm504_vm8, %v495_v52, %v497_v48  ;;  %1750 = vmatprep.subr.bf16.mxu0 %v1749_v44  ;;  %v2771_v44 = vrot.slane %v2203_v53, %v2066_v21 }
  0xd7   :  { %v521_v57 = vmul.f32 %v507_v56, %v428_v15  ;;  %v522_v19 = vmul.f32 %v508_v5, %v432_v16  ;;  %v2767_v15 = vrot.slane %v1955_v39, %v2105_v41  ;;  %v2768_v16 = vrot.slane %v2163_v11, %v2102_v40 }
  0xd9   :  { %v528_v49 = vadd.f32 %v521_v57, %v402_v28  ;;  %v529_v62 = vadd.f32 %v522_v19, %v403_v45  ;;  %v501_v18 = vpop.permute.xlu1 %500  ;;  %v499_v54 = vpop.permute.xlu0 %498  ;;  %1752 = vmatpush3.bf16.msra.mxu0 %v1751_v4  ;;  %v625_v33 = vmul.f32 %v612_v2, %v2767_v15  ;;  %v597_v4 = vcombine.high %v2583_v29, %v2583_v29 }
  0xda   :  { %v509_v51 = vsel %vm504_vm8, %v497_v48, %v499_v54  ;;  %v510_v32 = vsel %vm504_vm8, %v499_v54, %v501_v18  ;;  %1754 = vmatprep.subr.bf16.mxu0 %v1753_v47  ;;  %v2773_v48 = vrot.slane %v2203_v53, %v2105_v41  ;;  %v2774_v57 = vrot.slane %v2265_v0, %v2063_v20 }
  0xdb   :  { %v523_v9 = vmul.f32 %v509_v51, %v2768_v16  ;;  %v524_v7 = vmul.f32 %v510_v32, %v2769_v12  ;;  %v629_v28 = vadd.f32 %v2194_v35, %v528_v49  ;;  %v630_v45 = vadd.f32 %v2197_v36, %v529_v62 }
  0xdc   :  { %v2775_v49 = vrot.slane %v2265_v0, %v2066_v21  ;;  %v611_v54 = vrot.slane %v597_v4, %v1879_v8  ;;  %v2776_v15 = vrot.slane %v2265_v0, %v2102_v40  ;;  %v2777_v16 = vrot.slane %v1955_v39, %v2108_v43 }
  0xdd   :  { %v530_v26 = vadd.f32 %v523_v9, %v404_v31  ;;  %v531_v10 = vadd.f32 %v524_v7, %v405_v17  ;;  %v723_v55 = vpop.permute.xlu1 %722  ;;  %v721_v14 = vpop.permute.xlu0 %720  ;;  %1756 = vmatpush3.bf16.msra.mxu0 %v1755_v30  ;;  %v2772_v31 = vrot.slane %v2203_v53, %v2102_v40  ;;  %v2778_v12 = vrot.slane %v2163_v11, %v2108_v43 }
  0xde   :  { %v731_v59 = vsel %vm728_vm9, %v2433_v6, %v721_v14  ;;  %v732_v60 = vsel %vm728_vm9, %v721_v14, %v723_v55  ;;  %v626_v9 = vmul.f32 %v611_v54, %v2777_v16  ;;  %v899_v7 = vrot.slane %v2447_v50, %v2063_v20 }
  0xdf   :  { %v744_v34 = vmul.f32 %v731_v59, %v2770_v58  ;;  %v745_v35 = vmul.f32 %v732_v60, %v2771_v44  ;;  %v631_v63 = vadd.f32 %v624_v27, %v530_v26  ;;  %v632_v36 = vadd.f32 %v625_v33, %v531_v10 }
  0xe0   :  { %v903_v39 = vrot.slane %v2447_v50, %v2066_v21  ;;  %v907_v11 = vrot.slane %v2447_v50, %v2102_v40  ;;  %v2779_v14 = vrot.slane %v2203_v53, %v2108_v43 }
  0xe1   :  { %v751_v22 = vadd.f32 %v744_v34, %v629_v28  ;;  %v752_v42 = vadd.f32 %v745_v35, %v630_v45  ;;  %v727_v3 = vpop.permute.xlu1 %726  ;;  %v725_v24 = vpop.permute.xlu0 %724  ;;  %v2781_v35 = vrot.slane %v2265_v0, %v2108_v43 }
  0xe2   :  { %v733_v37 = vsel %vm728_vm9, %v723_v55, %v725_v24  ;;  %v734_v6 = vsel %vm728_vm9, %v725_v24, %v727_v3  ;;  %v748_v59 = vmul.f32 %v727_v3, %v2779_v14  ;;  %v1021_v3 = vrot.slane %v2468_v61, %v2063_v20 }
  0xe3   :  { %v746_v17 = vmul.f32 %v733_v37, %v2772_v31  ;;  %v747_v52 = vmul.f32 %v734_v6, %v2773_v48  ;;  %v915_v37 = vrot.slane %v2447_v50, %v2108_v43 }
  0xe5   :  { %v753_v56 = vadd.f32 %v746_v17, %v631_v63  ;;  %v754_v5 = vadd.f32 %v747_v52, %v632_v36  ;;  %v845_v2 = vpop.permute.xlu1 %844  ;;  %v843_v47 = vpop.permute.xlu0 %842 }
  0xe6   :  { %v853_v46 = vsel %vm850_vm10, %v2455_v23, %v843_v47  ;;  %v854_v38 = vsel %vm850_vm10, %v843_v47, %v845_v2 }
  0xe7   :  { %v866_v19 = vmul.f32 %v853_v46, %v2774_v57  ;;  %v867_v62 = vmul.f32 %v854_v38, %v2775_v49  ;;  %v1029_v38 = vrot.slane %v2468_v61, %v2102_v40  ;;  %v1025_v57 = vrot.slane %v2468_v61, %v2066_v21  ;;  %v1219_v21 = vld [vmem:[%s2764_s3 + $0x308] sm:$0xff] }
  0xe9   :  { %v873_v29 = vadd.f32 %v866_v19, %v751_v22  ;;  %v847_v30 = vpop.permute.xlu1 %846  ;;  %v503_v51 = vpop.permute.xlu0 %502  ;;  %v874_v32 = vadd.f32 %v867_v62, %v752_v42 }
  0xea   :  { %v855_v27 = vsel %vm850_vm10, %v845_v2, %v847_v30  ;;  %v511_v23 = vsel %vm504_vm8, %v501_v18, %v503_v51  ;;  %v1218_v51 = vld [vmem:[%s2764_s3 + $0x300] sm:$0xff]  ;;  %s1836_s3 = smov [#allocation6]  }
  0xeb   :  { %v868_v33 = vmul.f32 %v855_v27, %v2776_v15  ;;  %v525_v8 = vmul.f32 %v511_v23, %v2778_v12  ;;  %v1758_v16 = vpack.c.bf16 %v1219_v21, %v1218_v51  ;;  %s1512_s18 = sshll.u32 %s1836_s3, 4  ;;  %s1513_s18 = int_to_ptr.vmem [resolvable:$true] %s1512_s18 }
  0xec   :  { %s1797_s20 = scalar_lea.vmem %s1513_s18, 32  ;;  %p1802_p6 = scmp.lt.s32.totalorder %s1513_s18, %s1513_s18 }
  0xed   :  { %v875_v28 = vadd.f32 %v868_v33, %v753_v56  ;;  %v532_v45 = vadd.f32 %v525_v8, %v2628_v25  ;;  %v965_v26 = vpop.permute.xlu1 %964  ;;  %v849_v18 = vpop.permute.xlu0 %848  ;;  %v2780_v25 = vrot.slane %v2265_v0, %v2105_v41  ;;  %v911_v0 = vrot.slane %v2447_v50, %v2105_v41  ;;  %p1798_p5 = scmp.ne.s32.totalorder %s1513_s18, %s1797_s20  ;;  %p1803_p7 = scmp.lt.s32.totalorder %s1797_s20, %s1797_s20 }
  0xee   :  { %v975_v10 = vsel %vm972_vm11, %v2462_v13, %v965_v26  ;;  %v856_v55 = vsel %vm850_vm10, %v847_v30, %v849_v18  ;;  %v870_v63 = vmul.f32 %v849_v18, %v2781_v35  ;;  %v1037_v30 = vrot.slane %v2468_v61, %v2108_v43 }
  0xef   :  { %v633_v60 = vadd.f32 %v626_v9, %v532_v45  ;;  %v988_v58 = vmul.f32 %v975_v10, %v899_v7  ;;  %v869_v34 = vmul.f32 %v856_v55, %v2780_v25  ;;  %p1804_p8 = por %p1803_p7, %p1802_p6 }
  0xf1   :  { %v995_v44 = vadd.f32 %v988_v58, %v873_v29  ;;  %v755_v13 = vadd.f32 %v748_v59, %v633_v60  ;;  %v876_v36 = vadd.f32 %v869_v34, %v754_v5  ;;  %v969_v22 = vpop.permute.xlu1 %968  ;;  %v967_v42 = vpop.permute.xlu0 %966  ;;  %p1805_p9 = pnand %p1804_p8, %p1798_p5 }
  0xf2   :  { %v976_v24 = vsel %vm972_vm11, %v965_v26, %v967_v42  ;;  %v977_v53 = vsel %vm972_vm11, %v967_v42, %v969_v22 }
  0xf3   :  { %v877_v6 = vadd.f32 %v870_v63, %v755_v13  ;;  %v989_v31 = vmul.f32 %v976_v24, %v903_v39  ;;  %v990_v17 = vmul.f32 %v977_v53, %v907_v11 }
  0xf5   :  { %v997_v48 = vadd.f32 %v990_v17, %v875_v28  ;;  %v1087_v52 = vpop.permute.xlu1 %1086  ;;  %v971_v4 = vpop.permute.xlu0 %970  ;;  %v996_v56 = vadd.f32 %v989_v31, %v874_v32  ;;  %v1033_v32 = vrot.slane %v2468_v61, %v2105_v41  ;;  %v2782_v28 = vmov 0.0  }
  0xf6   :  { %v1097_v5 = vsel %vm1094_vm12, %v2475_v1, %v1087_v52  ;;  %v978_v2 = vsel %vm972_vm11, %v969_v22, %v971_v4  ;;  %v992_v47 = vmul.f32 %v971_v4, %v915_v37 }
  0xf7   :  { %v1110_v20 = vmul.f32 %v1097_v5, %v1021_v3  ;;  %v991_v46 = vmul.f32 %v978_v2, %v911_v0 }
  0xf8   :  { %v999_v19 = vadd.f32 %v992_v47, %v877_v6 }
  0xf9   :  { %v998_v50 = vadd.f32 %v991_v46, %v876_v36  ;;  %v1091_v49 = vpop.permute.xlu1 %1090  ;;  %v1089_v62 = vpop.permute.xlu0 %1088  ;;  %v1117_v54 = vadd.f32 %v1110_v20, %v995_v44 }
  0xfa   :  { %v1098_v29 = vsel %vm1094_vm12, %v1087_v52, %v1089_v62  ;;  %v1099_v1 = vsel %vm1094_vm12, %v1089_v62, %v1091_v49 }
  0xfb   :  { %v1112_v40 = vmul.f32 %v1099_v1, %v1029_v38  ;;  %v1111_v27 = vmul.f32 %v1098_v29, %v1025_v57 }
  0xfd   :  { %v1119_v23 = vadd.f32 %v1112_v40, %v997_v48  ;;  %v1093_v15 = vpop.permute.xlu0 %1092  ;;  %v1118_v33 = vadd.f32 %v1111_v27, %v996_v56 }
  0xfe   :  { %v1100_v9 = vsel %vm1094_vm12, %v1091_v49, %v1093_v15  ;;  %v1114_v43 = vmul.f32 %v1093_v15, %v1037_v30 }
  0xff   :  { %v1113_v12 = vmul.f32 %v1100_v9, %v1033_v32  ;;  %1358 = vmatprep.mubr.f32.mxu1 %v1118_v33 }
 0x100   :  { %v1121_v8 = vadd.f32 %v1114_v43, %v999_v19  ;;  %1359 = vmatmul.mubr.f32.vlgmr.msra.gmra.mrb[0].mxu1 %v1117_v54 }
 0x101   :  { %1759 = vmatpush3.bf16.msra.mxu1 %v1758_v16  ;;  %v1120_v7 = vadd.f32 %v1113_v12, %v998_v50  ;;  %1658 = vmatprep.mubr.msk.f32.mxu1 %vm1835_vm13, %v2782_v28 }
 0x103   :  { %1428 = vmatprep.mubr.f32.mxu0 %v1120_v7 }
 0x104   :  { %1429 = vmatmul.mubr.f32.vlgmr.msra.gmra.mrb[2].mxu0 %v1119_v23  ;;  %1659 = vmatmul.mubr.msk.f32.vlgmr.msra.gmra.mrb[2].mxu1 %vm1220_vm14, %v1121_v8 }
 0x193   :  { %v1578_v41 = vpop.f32.mrb[0].mxu0 }
 0x194   :  { %v1579_v61 = vpop.f32.mrb[1].mxu0 }
 0x195   :  { %v1580_v45 = vadd.f32 %v1579_v61, %v1578_v41 }
 0x1d3   :  { %v1613_v26 = vpop.f32.mrb[0].mxu1 }
 0x1d4   :  { %v1614_v18 = vpop.f32.mrb[1].mxu1 }
 0x1d5   :  { %v1615_v10 = vadd.f32 %v1614_v18, %v1613_v26 }
 0x1d7   :  { %v1361_v55 = vadd.f32 %v1615_v10, %v1580_v45  ;;  %v1648_v39 = vpop.f32.mrb[2].mxu0  ;;  %v1500_v11 = vpop.f32.mrb[2].mxu1 }
 0x1d8   :  { %v1649_v14 = vpop.f32.mrb[3].mxu0  ;;  %v1660_v59 = vpop.f32.mrb[3].mxu1 }
 0x1d9   :  { %v1650_v60 = vadd.f32 %v1649_v14, %v1648_v39 }
 0x1db   :  { %v1431_v58 = vadd.f32 %v1650_v60, %v1361_v55 }
 0x1dd   :  { %v1501_v25 = vadd.f32 %v1500_v11, %v1431_v58 }
 0x1df   :  { %1505 = vst.msk [vmem:[#allocation6] sm:$0x3] %vm1504_vm15, %v1501_v25 }
 0x1e0   :  { %1808 = shalt.err (!%p1805_p9)
}
 0x1e1   :  { %s1809_s25 = scalar_lea.hbm %s2765_s4, 32 }
 0x1e2   :  { %p1810_p10 = scmp.ne.s32.totalorder %s2765_s4, %s1809_s25  ;;  %p1813_p11 = scmp.lt.u32.totalorder %s1809_s25, %s2765_s4 }
 0x1e4   :  { %p1815_p12 = pnand %p1813_p11, %p1810_p10 }
 0x1e6   :  { %1818 = shalt.err (!%p1815_p12)
}
 0x1e7   :  { %1515 = dma.vmem_to_hbm [thread:$0]  %s1513_s18, 32, %s2765_s4, [#allocation4]  }
 0x1e8   :  { %1821 = dma.done.wait [#allocation4], 32  }
 0x1e9   :  { %1822 = vsyncadd [#allocation4], 4294967264 }
 0x1ea   :  { %1519 = vsyncpa [#allocation4], 1 }
 0x1eb   :  { %1520 = vsyncpa [#allocation5], 1 }

</bundles_post_ra>
